<compile_context>
chip_gen: v5e
topology: v5e:2x2
jax: 0.10.0
libtpu: 0.0.40
codegen_flags: <defaults>
</compile_context>

<pallas_src>
import functools

import jax
import jax.numpy as jnp
from jax.experimental import pallas as pl
from jax.experimental.pallas import tpu as pltpu


def _round_up(x: int, m: int) -> int:
    return ((x + m - 1) // m) * m


_VMEM_LIMIT_BYTES = 48 * 1024 * 1024   # explicit Mosaic scoped-VMEM limit
_VMEM_TILE_BUDGET = 32 * 1024 * 1024   # what our own tile accounting may use


def _choose_tile_rows(m: int, d: int, dp: int, in_itemsize: int,
                      out_itemsize: int, max_tm: int = 2048,
                      min_grid_steps: int = 4) -> int:
    """Row-tile size TM (multiple of 8) derived from the VMEM budget."""
    # Resident (single-buffered) fused weights + bias.
    resident = d * (2 * dp) * 2 + (2 * dp) * 4
    # Per-row VMEM: double-buffered x and out tiles + f32 (TM, 2*Dp) matmul
    # accumulator and gating temporaries (counted ~2x acc as headroom).
    per_row = 2 * d * in_itemsize + 2 * d * out_itemsize + 2 * (2 * dp) * 4
    budget = max(_VMEM_TILE_BUDGET - resident, 8 * per_row)
    tm = min(max_tm, budget // per_row)
    # Keep >= min_grid_steps grid steps (>=2 for tiny M) so v7x can shard the
    # "parallel" axis across both TensorCores and DMAs overlap compute.
    m8 = _round_up(m, 8)
    tm = min(tm, _round_up(pl.cdiv(m8, min_grid_steps), 8), m8)
    return max(8, (tm // 8) * 8)


def highway_kernel(x_ref, w_ref, b_ref, o_ref):
    """One row-tile of the highway layer.

    x_ref: (TM, D)      input rows, native dtype (no feature padding)
    w_ref: (D, 2*Dp)    bf16  [W_proj^T || W_gate^T], output dim padded to Dp
    b_ref: (1, 2*Dp)    f32   [b_proj || b_gate], zero-padded
    o_ref: (TM, D)      highway output, same dtype as input
    """
    d = x_ref.shape[-1]
    dp = w_ref.shape[-1] // 2

    x = x_ref[...]
    xf = x.astype(jnp.float32)           # residual term in f32

    # Single fused MXU pass for both linear layers: bf16 operands, f32 accumulate.
    acc = jnp.dot(x.astype(jnp.bfloat16), w_ref[...],
                  preferred_element_type=jnp.float32) + b_ref[...]

    proj = jnp.maximum(acc[:, :dp], 0.0)             # ReLU(x @ Wp^T + bp)
    g = acc[:, dp:]
    gate = 0.5 * (jnp.tanh(0.5 * g) + 1.0)           # sigmoid(g), EUP-friendly form

    if d != dp:                                      # drop padded output columns
        proj = proj[:, :d]
        gate = gate[:, :d]

    # gate*proj + (1-gate)*x == gate*(proj - x) + x  (fewer VALU ops)
    o_ref[...] = (gate * (proj - xf) + xf).astype(o_ref.dtype)


def prepare_highway_params(w_proj, b_proj, w_gate, b_gate):
    """One-time parameter packing (do NOT call per forward step).

    torch.nn.Linear computes x @ W.T + b with W of shape (out, in); we pass
    W.T, pad only the *output* dim to a multiple of 128 and concatenate
    proj||gate so one MXU pass produces both projections.
    """
    D = w_proj.shape[0]
    Dp = _round_up(D, 128)

    def prep_w(w):
        return jnp.pad(w.T.astype(jnp.float32), ((0, 0), (0, Dp - D)))

    w_fused = jnp.concatenate([prep_w(w_proj), prep_w(w_gate)], axis=1)  # (D, 2Dp)
    w_fused = w_fused.astype(jnp.bfloat16)                               # MXU operand
    b_fused = jnp.concatenate([
        jnp.pad(b_proj.astype(jnp.float32), (0, Dp - D)),
        jnp.pad(b_gate.astype(jnp.float32), (0, Dp - D)),
    ]).reshape(1, 2 * Dp)
    return w_fused, b_fused


@functools.partial(jax.jit, static_argnames=("max_tm",))
def highway_forward(x_input, w_fused, b_fused, *, max_tm=2048):
    """x_input: (L, B, D) in its native dtype. w_fused: (D, 2*Dp) bf16, b_fused: (1, 2*Dp) f32."""
    L, B, D = x_input.shape
    M = L * B
    Dp = w_fused.shape[-1] // 2

    x2d = x_input.reshape(M, D)          # metadata-only reshape; no pad, no cast
    out_dtype = x_input.dtype

    TM = _choose_tile_rows(M, D, Dp,
                           jnp.dtype(x2d.dtype).itemsize,
                           jnp.dtype(out_dtype).itemsize,
                           max_tm=max_tm)
    grid = (pl.cdiv(M, TM),)             # non-divisible tail handled by Pallas masking

    out2d = pl.pallas_call(
        highway_kernel,
        out_shape=jax.ShapeDtypeStruct((M, D), out_dtype),
        grid=grid,
        in_specs=[
            pl.BlockSpec((TM, D), lambda i: (i, 0)),                       # x rows: tiled
            pl.BlockSpec((D, 2 * Dp), lambda i: (0, 0),
                         pipeline_mode=pl.Buffered(1)),                    # fused W: resident
            pl.BlockSpec((1, 2 * Dp), lambda i: (0, 0),
                         pipeline_mode=pl.Buffered(1)),                    # fused b: resident
        ],
        out_specs=pl.BlockSpec((TM, D), lambda i: (i, 0)),
        compiler_params=pltpu.CompilerParams(
            dimension_semantics=("parallel",),          # dual-TC sharding on v7x
            vmem_limit_bytes=_VMEM_LIMIT_BYTES,         # explicit (v5e default is 16 MiB)
        ),
    )(x2d, w_fused, b_fused)

    return out2d.reshape(L, B, D)


if __name__ == "__main__":
    # Shapes implied by the module: (max_sentence_length, batch_size, input_size)
    L, B, D = 8, 2, 32

    key = jax.random.PRNGKey(0)
    kx, kwp, kbp, kwg, kbg = jax.random.split(key, 5)

    x = jax.random.normal(kx, (L, B, D), dtype=jnp.float32)

    # Deterministic synthetic parameters (uniform in [-1/sqrt(D), 1/sqrt(D)],
    # matching torch.nn.Linear's default init range).
    bound = 1.0 / (D ** 0.5)
    w_proj = jax.random.uniform(kwp, (D, D), jnp.float32, -bound, bound)
    b_proj = jax.random.uniform(kbp, (D,), jnp.float32, -bound, bound)
    w_gate = jax.random.uniform(kwg, (D, D), jnp.float32, -bound, bound)
    b_gate = jax.random.uniform(kbg, (D,), jnp.float32, -bound, bound)

    # One-time parameter packing, amortized across all forward calls.
    w_fused, b_fused = jax.block_until_ready(
        prepare_highway_params(w_proj, b_proj, w_gate, b_gate))

    out = highway_forward(x, w_fused, b_fused)
    jax.block_until_ready(out)
    assert out.shape == (L, B, D)
    assert out.dtype == x.dtype

    # Reference 1: exact f32 torch semantics (loose tolerance due to bf16 MXU operands).
    proj_ref = jax.nn.relu(x @ w_proj.T + b_proj)
    gate_ref = jax.nn.sigmoid(x @ w_gate.T + b_gate)
    ref_f32 = gate_ref * proj_ref + (1.0 - gate_ref) * x
    assert jnp.allclose(out, ref_f32, atol=5e-2, rtol=5e-2), "mismatch vs f32 reference"

    # Reference 2: mimic the kernel's bf16 matmul operands (tight tolerance).
    # Residual uses f32 x, exactly as in the kernel.
    xb = x.astype(jnp.bfloat16).astype(jnp.float32)
    wpb = w_proj.astype(jnp.bfloat16).astype(jnp.float32)
    wgb = w_gate.astype(jnp.bfloat16).astype(jnp.float32)
    proj_b = jax.nn.relu(xb @ wpb.T + b_proj)
    gate_b = jax.nn.sigmoid(xb @ wgb.T + b_gate)
    ref_b = gate_b * proj_b + (1.0 - gate_b) * x
    assert jnp.allclose(out, ref_b, atol=2e-3, rtol=2e-3), "mismatch vs bf16-matched reference"

    print("KERNEL_OK")
</pallas_src>

<mosaic_0001>
module attributes {stable_mosaic.version = 11 : i64} {
  func.func @highway_kernel(%arg0: i32, %arg1: memref<8x32xf32, #tpu.memory_space<vmem>>, %arg2: memref<32x256xbf16, #tpu.memory_space<vmem>>, %arg3: memref<1x256xf32, #tpu.memory_space<vmem>>, %arg4: memref<8x32xf32, #tpu.memory_space<vmem>>) attributes {dimension_semantics = [#tpu.dimension_semantics<parallel>], iteration_bounds = array<i64: 2>, scalar_prefetch = 0 : i64, scratch_operands = 0 : i64, tpu.core_type = #tpu.core_type<tc>, window_params = [{transform_indices = @transform_0, window_bounds = array<i64: 8, 32>}, {pipeline_mode = #tpu.pipeline_mode<synchronous>, transform_indices = @transform_1, window_bounds = array<i64: 32, 256>}, {pipeline_mode = #tpu.pipeline_mode<synchronous>, transform_indices = @transform_2, window_bounds = array<i64: 1, 256>}, {transform_indices = @transform_3, window_bounds = array<i64: 8, 32>}]} {
    %c0 = arith.constant 0 : index
    %c0_0 = arith.constant 0 : index
    %0 = vector.load %arg1[%c0, %c0_0] : memref<8x32xf32, #tpu.memory_space<vmem>>, vector<8x32xf32>
    %1 = arith.truncf %0 : vector<8x32xf32> to vector<8x32xbf16>
    %c0_1 = arith.constant 0 : index
    %c0_2 = arith.constant 0 : index
    %2 = vector.load %arg2[%c0_1, %c0_2] : memref<32x256xbf16, #tpu.memory_space<vmem>>, vector<32x256xbf16>
    %cst = arith.constant dense<0.000000e+00> : vector<8x256xf32>
    %3 = tpu.matmul %1, %2, %cst {dimension_numbers = #tpu.dot_dimension_numbers<[1], [0], [0], [1], [0, 0, 1, 1], [], []>} : vector<8x32xbf16>, vector<32x256xbf16>, vector<8x256xf32> -> vector<8x256xf32>
    %c0_3 = arith.constant 0 : index
    %c0_4 = arith.constant 0 : index
    %4 = vector.load %arg3[%c0_3, %c0_4] : memref<1x256xf32, #tpu.memory_space<vmem>>, vector<1x256xf32>
    %5 = vector.broadcast %4 : vector<1x256xf32> to vector<8x256xf32>
    %6 = arith.addf %3, %5 : vector<8x256xf32>
    %7 = vector.extract_strided_slice %6 {offsets = [0, 0], sizes = [8, 128], strides = [1, 1]} : vector<8x256xf32> to vector<8x128xf32>
    %cst_5 = arith.constant 0.000000e+00 : f32
    %8 = vector.broadcast %cst_5 : f32 to vector<8x128xf32>
    %9 = arith.maximumf %7, %8 : vector<8x128xf32>
    %10 = vector.extract_strided_slice %6 {offsets = [0, 128], sizes = [8, 128], strides = [1, 1]} : vector<8x256xf32> to vector<8x128xf32>
    %cst_6 = arith.constant 5.000000e-01 : f32
    %11 = vector.broadcast %cst_6 : f32 to vector<8x128xf32>
    %12 = arith.mulf %11, %10 : vector<8x128xf32>
    %13 = math.tanh %12 : vector<8x128xf32>
    %cst_7 = arith.constant 1.000000e+00 : f32
    %14 = vector.broadcast %cst_7 : f32 to vector<8x128xf32>
    %15 = arith.addf %13, %14 : vector<8x128xf32>
    %cst_8 = arith.constant 5.000000e-01 : f32
    %16 = vector.broadcast %cst_8 : f32 to vector<8x128xf32>
    %17 = arith.mulf %16, %15 : vector<8x128xf32>
    %18 = vector.extract_strided_slice %9 {offsets = [0, 0], sizes = [8, 32], strides = [1, 1]} : vector<8x128xf32> to vector<8x32xf32>
    %19 = vector.extract_strided_slice %17 {offsets = [0, 0], sizes = [8, 32], strides = [1, 1]} : vector<8x128xf32> to vector<8x32xf32>
    %20 = arith.subf %18, %0 : vector<8x32xf32>
    %21 = arith.mulf %19, %20 : vector<8x32xf32>
    %22 = arith.addf %21, %0 : vector<8x32xf32>
    %c0_9 = arith.constant 0 : index
    %c0_10 = arith.constant 0 : index
    %23 = vector.load %arg4[%c0_9, %c0_10] : memref<8x32xf32, #tpu.memory_space<vmem>>, vector<8x32xf32>
    tpu.vector_store %arg4[%c0_9, %c0_10], %22 {strides = array<i32>} : memref<8x32xf32, #tpu.memory_space<vmem>>, vector<8x32xf32>,
    return
  }
  func.func @transform_0(%arg0: i32) -> (i32, i32) {
    %c0_i32 = arith.constant 0 : i32
    %c0_i32_0 = arith.constant 0 : i32
    return %arg0, %c0_i32 : i32, i32
  }
  func.func @transform_1(%arg0: i32) -> (i32, i32) {
    %c0_i32 = arith.constant 0 : i32
    %c0_i32_0 = arith.constant 0 : i32
    %c0_i32_1 = arith.constant 0 : i32
    return %c0_i32, %c0_i32_0 : i32, i32
  }
  func.func @transform_2(%arg0: i32) -> (i32, i32) {
    %c0_i32 = arith.constant 0 : i32
    %c0_i32_0 = arith.constant 0 : i32
    %c0_i32_1 = arith.constant 0 : i32
    return %c0_i32, %c0_i32_0 : i32, i32
  }
  func.func @transform_3(%arg0: i32) -> (i32, i32) {
    %c0_i32 = arith.constant 0 : i32
    %c0_i32_0 = arith.constant 0 : i32
    return %arg0, %c0_i32 : i32, i32
  }
}

</mosaic_0001>

<bundles_post_ra>
// kernel: highway_forward.1
= control target key start
LH: loop header
LB: loop body
LE: loop exit
PB: predicated region body
PF: predicated region fallthrough
CT: control target
= control target key end

     0   :  { %8 = vsyncpa [#allocation3], 0  ;;  %s771_s0 = inlined_call_operand.hbm [shape: f32[16,32], index: 0, kind: input, shape index: {}]   ;;  %s772_s1 = inlined_call_operand.hbm [shape: bf16[32,256], index: 1, kind: input, shape index: {}]   ;;  %s773_s2 = inlined_call_operand.vmem [shape: f32[1,256], index: 2, kind: input, shape index: {}]   ;;  %s774_s3 = inlined_call_operand.hbm [shape: f32[16,32], index: 3, kind: output, shape index: {}]  }
   0x1   :  { %10 = vsyncpa [#allocation3 + $0x1], 0 }
   0x2   :  { %11 = vsyncpa [#allocation6], 0 }
   0x3   :  { %12 = vsyncpa [#allocation4], 0 }
   0x4   :  { %14 = vsyncpa [#allocation4 + $0x1], 0  ;;  %s625_s12 = smov 0   ;;  %s627_s13 = smov 0  }
   0x5   :  { %s629_s14 = smov 0   ;;  %s631_s15 = smov 0  }
   0x6 LB: > { %s130_s18 = sshll.u32 %s772_s1, 4  ;;  %s649_s19 = sadd.s32 4294967295, %s600_s15   ;;  %s600_s15 = sphi %s631_s15, %s784_s15   ;;  %s596_s14 = sphi %s629_s14, %s783_s14   ;;  %s592_s13 = sphi %s627_s13, %s782_s13   ;;  %s588_s12 = sphi %s625_s12, %s781_s12   ;;  %s131_s18 = int_to_ptr.hbm [resolvable:$true] %s130_s18 }
   0x7   : > { %p374_p0 = scmp.ge.s32.totalorder %s600_s15, 1  ;;  %p41_p1 = scmp.eq.s32.totalorder %s649_s19, 0 }
   0x8   : > { %p119_p2 = scmp.lt.s32.totalorder %s600_s15, 3  ;;  %s602_s21 = smov [#allocation5]  }
   0x9   : > { %s132_s22 = sshll.u32 %s602_s21, 4  ;;  %s603_s23 = smov 128   ;;  %s133_s22 = int_to_ptr.vmem [resolvable:$true] %s132_s22 }
   0xa   : > { %p654_p3 = pnand %p374_p0, %p119_p2  ;;  %s604_s24 = smov 8  }
   0xb   : > { %s373_s25 = sadd.s32 4294967294, %s600_s15   ;;  %s665_s26 = sadd.s32 1, %s600_s15  }
   0xc   : > { %p417_p4 = pneg %p654_p3  ;;  %s27_s27 = sadd.s32 1, %s596_s14 }
   0xd   : > { %s24_s28 = ssub.s32 %s600_s15, %s665_s26  ;;  %p34_p7 = scmp.ne.s32.totalorder %s596_s14, %s592_s13 }
   0xe   : > { %p418_p6 = pnand %p417_p4, %p41_p1  ;;  %p25_p8 = scmp.eq.s32.totalorder %s24_s28, 0 }
   0xf   : > { %p35_p9 = scmp.eq.s32.totalorder %s600_s15, 0  ;;  %p40_p10 = scmp.ne.s32.totalorder %s592_s13, %s588_s12 }
  0x10   : > { %420 = dma.hbm_to_vmem [thread:$0]  (!%p418_p6), %s131_s18, 512, %s133_s22, [#allocation6], %s603_s23, %s603_s23, %s604_s24  }
  0x11   : > { %p106_p11 = scmp.eq.s32.totalorder %s649_s19, 1  ;;  %p681_p12 = por %p41_p1, %p40_p10 }
  0x12   : > { %s677_s29 = scalar_select %p25_p8, %s596_s14, %s27_s27  }
  0x13   : > { %p685_p13 = por %p106_p11, %p34_p7  ;;  %p112_p0 = scmp.eq.s32.totalorder %s373_s25, 1 }
  0x14   : > { %p36_p2 = por %p35_p9, %p34_p7  ;;  %s149_s5 = sand.u32 1, %s596_s14  }
  0x15   : > { %p690_p4 = por %p112_p0, %p40_p10  ;;  %p430_p6 = scmp.lt.s32.totalorder %s600_s15, 2 }
  0x16   : > { %s377_s7 = sshll.u32 %s149_s5, 3  ;;  %s378_s8 = sshll.u32 %s600_s15, 3 }
  0x17   : > { %s157_s11 = scalar_lea.hbm %s771_s0, %s378_s8  ;;  %s153_s17 = scalar_lea.vmem [#allocation2], %s377_s7 }
  0x18   : > { %s159_s16 = sshll.u32 %s157_s11, 4  ;;  %s161_s18 = sshll.u32 %s153_s17, 4  ;;  %s160_s16 = int_to_ptr.hbm [resolvable:$true] %s159_s16  ;;  %s162_s18 = int_to_ptr.vmem [resolvable:$true] %s161_s18 }
  0x19   : > { %p699_p8 = pnand %p430_p6, %p36_p2  ;;  %s150_s22 = scalar_lea.sflag [#allocation3], %s149_s5 }
  0x1a   : > { %s500_s23 = sshra.s32 %s160_s16, 4  ;;  %s507_s28 = scalar_lea.hbm %s771_s0, 16  ;;  %s501_s23 = int_to_ptr.hbm [resolvable:$true] %s500_s23 }
  0x1b   : > { %s502_s24 = scalar_lea.hbm %s501_s23, 8  ;;  %p504_p9 = pneg %p699_p8 }
  0x1c   : > { %p503_p7 = scmp.ne.s32.totalorder %s501_s23, %s502_s24  ;;  %p508_p0 = scmp.lt.s32.totalorder %s501_s23, %s771_s0 }
  0x1d   : > { %p509_p2 = scmp.lt.s32.totalorder %s507_s28, %s502_s24 }
  0x1e   : > { %p505_p10 = pnand %p504_p9, %p503_p7 }
  0x1f   : > { %p510_p6 = por %p509_p2, %p508_p0 }
  0x20   : > { %p506_p11 = pneg %p505_p10 }
  0x22   : > { %p511_p5 = pnand %p510_p6, %p506_p11 }
  0x24   : > { %514 = shalt.err (!%p511_p5)
}
  0x25   : > { %424 = dma.hbm_to_vmem [thread:$0]  (!%p699_p8), %s160_s16, 128, %s162_s18, %s150_s22  }
  0x26   : > { %170 = sbr.rel (%p654_p3) target bundleno = 204 (0xcc), region = 32  ;;  %s716_s5 = sand.u32 (!%p654_p3), 1, %s592_s13  }
  0x27   : > { %s380_s9 = sshll.u32 (!%p654_p3), %s716_s5, 3  ;;  %s173_s10 = scalar_lea.sflag (!%p654_p3), [#allocation3], %s716_s5 }
  0x28   : > { %s176_s11 = scalar_lea.vmem (!%p654_p3), [#allocation2], %s380_s9 }
  0x2b   : > { %575 = dma.done.wait (%p681_p12), %s173_s10, 128  }
  0x2c   : > { %577 = vsyncadd (%p681_p12), %s173_s10, 4294967168 }
  0x2d   : > { %579 = dma.done.wait (%p41_p1), [#allocation6], 512  }
  0x2e   : > { %581 = vsyncadd (%p41_p1), [#allocation6], 4294966784  ;;  %v407_v0 = vld [vmem:[#allocation5 + $0x14] sm:$0xf]  ;;  %v395_v1 = vld [vmem:[#allocation5 + $0x18] sm:$0xf0] }
  0x2f   : > { %v393_v2 = vld [vmem:[#allocation5 + $0x10] sm:$0xf]  ;;  %v398_v3 = vor.u32 %v407_v0, %v395_v1  ;;  %v408_v4 = vld [vmem:[#allocation5 + $0x14] sm:$0xf0]  ;;  %v405_v5 = vld [vmem:[#allocation5 + $0x4] sm:$0xf] }
  0x30   : > { %v387_v6 = vld [vmem:[#allocation5 + $0x8] sm:$0xf0]  ;;  %v394_v7 = vor.u32 %v408_v4, %v393_v2  ;;  %v385_v8 = vld [vmem:[#allocation5] sm:$0xf]  ;;  %v406_v9 = vld [vmem:[#allocation5 + $0x4] sm:$0xf0] }
  0x31   : > { %261 = vmatpush.bf16.msra.mxu1 %v398_v3  ;;  %v390_v10 = vor.u32 %v405_v5, %v387_v6  ;;  %v206_v11 = vld [vmem:[%s176_s11] sm:$0xff]  ;;  %v386_v12 = vor.u32 %v406_v9, %v385_v8  ;;  %vm238_vm0 = vcmask 261120   ;;  %s402_s16 = sshll.u32 %s649_s19, 3  ;;  %s204_s22 = scalar_lea.vmem [#allocation7], %s380_s9 }
  0x32   : > { %248 = vmatpush.bf16.msra.mxu0 %v394_v7  ;;  %v207_v13 = vpack.c.bf16 %v206_v11, %v206_v11  ;;  %v212_v14 = vld [vmem:[%s773_s2] sm:$0x3]  ;;  %s288_s21 = scalar_lea.hbm %s774_s3, %s402_s16  ;;  %s290_s23 = sshll.u32 %s204_s22, 4  ;;  %s291_s23 = int_to_ptr.vmem [resolvable:$true] %s290_s23 }
  0x33   : > { %v215_v15 = vperm.slane %v212_v14, 1  ;;  %v214_v17 = vperm.slane %v212_v14, 0  ;;  %s292_s24 = sshll.u32 %s288_s21, 4  ;;  %s278_s19 = scalar_lea.sflag [#allocation4], %s716_s5  ;;  %s293_s24 = int_to_ptr.hbm [resolvable:$true] %s292_s24 }
  0x34   : > { %s544_s25 = sshra.s32 %s293_s24, 4  ;;  %s550_s8 = scalar_lea.hbm %s774_s3, 16  ;;  %s545_s25 = int_to_ptr.hbm [resolvable:$true] %s544_s25 }
  0x35   : > { %262 = vmatpush.bf16.msra.mxu1 %v390_v10  ;;  %s546_s27 = scalar_lea.hbm %s545_s25, 8  ;;  %p551_p12 = scmp.lt.s32.totalorder %s545_s25, %s774_s3 }
  0x36   : > { %249 = vmatpush.bf16.msra.mxu0 %v386_v12  ;;  %p547_p1 = scmp.ne.s32.totalorder %s545_s25, %s546_s27  ;;  %p552_p8 = scmp.lt.s32.totalorder %s550_s8, %s546_s27 }
  0x38   : > { %400 = vmatmul.msk.bf16.vlgmr.msra.gmra.mxu1 %vm238_vm0, %v207_v13  ;;  %p548_p3 = pnand %p547_p1, %p685_p13  ;;  %p553_p7 = por %p552_p8, %p551_p12 }
  0x39   : > { %399 = vmatmul.msk.bf16.vlgmr.msra.gmra.mxu0 %vm238_vm0, %v207_v13 }
  0x3a   : > { %p549_p5 = pneg %p548_p3 }
  0x3c   : > { %p554_p9 = pnand %p553_p7, %p549_p5 }
  0xb5   : > { %v264_v16 = vpop.f32.mrf.mxu1 }
  0xb6   : > { %v265_v18 = vadd.f32 %v264_v16, %v215_v15  ;;  %v251_v19 = vpop.f32.mrf.mxu0 }
  0xb7   : > { %v252_v21 = vadd.f32 %v251_v19, %v214_v17 }
  0xb8   : > { %v269_v20 = vmul.f32 0.5, %v265_v18 }
  0xb9   : > { %v268_v22 = vmax.f32 %v252_v21, 0.0 }
  0xba   : > { %468 = vtanh.f32 %v269_v20 }
  0xbb   : > { %v273_v27 = vsub.f32 %v268_v22, %v206_v11 }
  0xbd   : > { %v266_v23 = vpop.f32.mrf.mxu1 }
  0xbe   : > { %v253_v24 = vpop.f32.mrf.mxu0 }
  0xc0   : > { %v469_v25 = vpop.eup %468 }
  0xc1   : > { %v271_v26 = vadd.f32 1.0, %v469_v25 }
  0xc3   : > { %v272_v28 = vmul.f32 0.5, %v271_v26 }
  0xc5   : > { %v274_v29 = vmul.f32 %v273_v27, %v272_v28 }
  0xc7   : > { %v275_v30 = vadd.f32 %v274_v29, %v206_v11 }
  0xc9   : > { %276 = vst.msk [vmem:[%s204_s22] sm:$0xff] %vm238_vm0, %v275_v30 }
  0xca   : > { %557 = shalt.err (!%p554_p9)
}
  0xcb   : > { %415 = dma.vmem_to_hbm [thread:$0]  (%p685_p13), %s291_s23, 128, %s293_s24, %s278_s19  }
  0xcc PF: > { %s304_s5 = sand.u32 1, %s588_s12   ;;  %p780_p10 = scmp.ge.s32.totalorder %s600_s15, 2 }
  0xcd   : > { %s305_s11 = scalar_lea.sflag [#allocation4], %s304_s5 }
  0xce   : > { %p426_p11 = pnand %p780_p10, %p690_p4 }
  0xd0   : > { %p427_p0 = pneg %p426_p11 }
  0xd2   : > { %583 = dma.done.wait (%p427_p0), %s305_s11, 128  }
  0xd3   : > { %585 = vsyncadd (%p427_p0), %s305_s11, 4294967168  ;;  %p17_p2 = scmp.ge.s32.totalorder %s665_s26, 4   ;;  %s781_s12 = smov %s592_s13 }
  0xd4   : > { %s782_s13 = smov %s596_s14  ;;  %s783_s14 = smov %s677_s29 }
  0xd5   : > { %s784_s15 = smov %s665_s26  ;;  %19 = sbr.rel (!%p17_p2) target bundleno = 6 (0x6), region = 81 }
  0xda   :  { %311 = vsyncpa [#allocation3], 1 }
  0xdb   :  { %313 = vsyncpa [#allocation3 + $0x1], 1 }
  0xdc   :  { %314 = vsyncpa [#allocation6], 1 }
  0xdd   :  { %315 = vsyncpa [#allocation4], 1 }
  0xde   :  { %317 = vsyncpa [#allocation4 + $0x1], 1 }

</bundles_post_ra>
